<compile_context>
chip_gen: v7x
topology: tpu7x:2x2x1
jax: 0.10.0
libtpu: 0.0.40
codegen_flags: <defaults>
</compile_context>

<pallas_src>
import functools

import jax
import jax.numpy as jnp
from jax.experimental import pallas as pl
from jax.experimental.pallas import tpu as pltpu

NUM_CLASSES = 25


def _round_up(x, m):
    return (x + m - 1) // m * m


def _l1_loss_kernel(pred_ref, tgt_ref, out_ref, acc_vec_ref, acc_mat_ref, *,
                    batch, tile_rows, n_inner, apply_mask):
    # pred_ref    : (tb, C)     model outputs for this block (any float dtype)
    # tgt_ref     : (1, 1, tb)  int32 class ids for this block (lane-dense)
    # out_ref     : (1, 1, C)   f32 per-outer-index partial sums
    # acc_vec_ref : (1, C)      f32 VMEM scratch: sum_r |pred[r, c]|
    # acc_mat_ref : (C, C)      f32 VMEM scratch: onehot_t @ (|1-pred| - |pred|)
    o = pl.program_id(0)
    j = pl.program_id(1)

    @pl.when(j == 0)
    def _init():
        acc_vec_ref[...] = jnp.zeros_like(acc_vec_ref)
        acc_mat_ref[...] = jnp.zeros_like(acc_mat_ref)

    pred = pred_ref[...].astype(jnp.float32)                    # (tb, C)
    tb, c = pred.shape

    # Transposed one-hot built directly from the lane-dense target row:
    #   onehot_t[k, r] = (target[r] == k)        -> (C, tb), no relayout needed.
    tgt_row = tgt_ref[0]                                        # (1, tb) int32
    cls_t = jax.lax.broadcasted_iota(jnp.int32, (c, tb), 0)
    onehot_t = (cls_t == tgt_row).astype(jnp.float32)           # (C, tb)

    # |onehot - p| = |p| + onehot * (|1-p| - |p|)   (onehot in {0, 1})
    abs_p = jnp.abs(pred)
    h = jnp.abs(1.0 - pred) - abs_p                             # (tb, C)

    def _accumulate(abs_p_v, h_v):
        acc_vec_ref[...] += jnp.sum(abs_p_v, axis=0, keepdims=True)
        acc_mat_ref[...] += jnp.dot(onehot_t, h_v,
                                    preferred_element_type=jnp.float32)

    if apply_mask:
        # Only the final logical block (and the at-most-one clamped overflow
        # block when n_blocks % n_outer != 0) contains rows >= batch.
        g = o * n_inner + j                       # logical block id
        needs_mask = (g + 1) * tile_rows > batch

        @pl.when(jnp.logical_not(needs_mask))
        def _full():
            _accumulate(abs_p, h)

        @pl.when(needs_mask)
        def _tail():
            limit = batch - g * tile_rows         # valid rows in this block
            rows = jax.lax.broadcasted_iota(jnp.int32, (tb, c), 0)
            keep = rows < limit
            _accumulate(jnp.where(keep, abs_p, 0.0), jnp.where(keep, h, 0.0))
    else:
        _accumulate(abs_p, h)

    @pl.when(j == pl.num_programs(1) - 1)
    def _finalize():
        eye = (jax.lax.broadcasted_iota(jnp.int32, (c, c), 0)
               == jax.lax.broadcasted_iota(jnp.int32, (c, c), 1)
               ).astype(jnp.float32)
        diag = jnp.sum(acc_mat_ref[...] * eye, axis=0, keepdims=True)  # (1, C)
        out_ref[...] = (acc_vec_ref[...] + diag).reshape(1, 1, c)


def l1_loss(output, target, *, tile_rows=8192):
    """output: (B, 25) float (f32 or bf16), target: (B,) int -> f32 scalar."""
    B, C = output.shape
    assert C == NUM_CLASSES

    # Row tile: multiple of 16 sublanes (so bf16 predictions tile cleanly),
    # capped so tiny batches use a single block.
    tb = min(_round_up(tile_rows, 16), _round_up(B, 16))
    n_blocks = pl.cdiv(B, tb)

    # Outer "parallel" axis so v7x's two TensorCores each stream half the
    # batch; harmless on 1-TC chips.
    n_outer = 2 if n_blocks >= 2 else 1
    n_inner = pl.cdiv(n_blocks, n_outer)
    apply_mask = (n_outer * n_inner * tb != B)

    # Lane-dense target: (n_blocks, 1, tb) int32, contiguous per block.
    pad = n_blocks * tb - B
    tgt = target.astype(jnp.int32)
    if pad:
        tgt = jnp.pad(tgt, (0, pad))
    tgt = tgt.reshape(n_blocks, 1, tb)

    def _block(o, j):
        # Clamp so a possible overflow block (n_blocks % n_outer != 0) re-reads
        # a valid block; its contribution is masked to zero in-kernel.
        return jnp.minimum(o * n_inner + j, n_blocks - 1)

    kernel = functools.partial(
        _l1_loss_kernel, batch=B, tile_rows=tb, n_inner=n_inner,
        apply_mask=apply_mask)

    # Real (lane-padded) HBM traffic: prediction rows are stored padded to
    # 128 lanes, so the DMA moves ~128 * itemsize bytes per row.
    pred_bytes = _round_up(B, 8) * 128 * output.dtype.itemsize
    tgt_bytes = n_blocks * max(tb, 128) * 4

    partials = pl.pallas_call(
        kernel,
        out_shape=jax.ShapeDtypeStruct((n_outer, 1, C), jnp.float32),
        grid=(n_outer, n_inner),
        in_specs=[
            pl.BlockSpec((tb, C), lambda o, j: (_block(o, j), 0)),
            pl.BlockSpec((1, 1, tb), lambda o, j: (_block(o, j), 0, 0)),
        ],
        out_specs=pl.BlockSpec((1, 1, C), lambda o, j: (o, 0, 0)),
        scratch_shapes=[pltpu.VMEM((1, C), jnp.float32),
                        pltpu.VMEM((C, C), jnp.float32)],
        compiler_params=pltpu.CompilerParams(
            dimension_semantics=("parallel", "arbitrary"),
            vmem_limit_bytes=40 * 1024 * 1024),
        cost_estimate=pl.CostEstimate(
            flops=6 * B * C + 2 * B * C * C,
            transcendentals=0,
            bytes_accessed=pred_bytes + tgt_bytes + n_outer * C * 4),
    )(output, tgt)

    # Tiny final reduction + mean over the batch in the wrapper.
    return jnp.sum(partials) / jnp.float32(B)


def l1_loss_ref(output, target):
    onehot = jax.nn.one_hot(target, NUM_CLASSES, dtype=jnp.float32)
    diff = jnp.abs(onehot - output.astype(jnp.float32))
    return jnp.mean(jnp.sum(diff, axis=1), axis=0)


if __name__ == "__main__":
    key = jax.random.PRNGKey(0)
    k_out, k_tgt = jax.random.split(key)

    # 1) Ragged batch, single block (exercises in-kernel tail masking).
    B = 37
    output = jax.random.normal(k_out, (B, NUM_CLASSES), dtype=jnp.float32)
    target = jax.random.randint(k_tgt, (B,), 0, NUM_CLASSES, dtype=jnp.int32)
    loss = jax.block_until_ready(l1_loss(output, target))
    ref = jax.block_until_ready(l1_loss_ref(output, target))
    assert jnp.allclose(loss, ref, rtol=1e-5, atol=1e-4), (loss, ref)

    # 2) Multi-block 2-D grid (parallel outer axis x reduction axis, no tail).
    B2 = 64
    out2 = jax.random.normal(k_out, (B2, NUM_CLASSES), dtype=jnp.float32)
    tgt2 = jax.random.randint(k_tgt, (B2,), 0, NUM_CLASSES, dtype=jnp.int32)
    loss2 = jax.block_until_ready(l1_loss(out2, tgt2, tile_rows=16))
    ref2 = jax.block_until_ready(l1_loss_ref(out2, tgt2))
    assert jnp.allclose(loss2, ref2, rtol=1e-5, atol=1e-4), (loss2, ref2)

    # 3) bf16 predictions streamed as-is (no wrapper-side cast), ragged tail.
    B3 = 100
    out3 = jax.random.normal(k_out, (B3, NUM_CLASSES),
                             dtype=jnp.float32).astype(jnp.bfloat16)
    tgt3 = jax.random.randint(k_tgt, (B3,), 0, NUM_CLASSES, dtype=jnp.int32)
    loss3 = jax.block_until_ready(l1_loss(out3, tgt3, tile_rows=32))
    ref3 = jax.block_until_ready(l1_loss_ref(out3, tgt3))
    assert jnp.allclose(loss3, ref3, rtol=1e-5, atol=1e-4), (loss3, ref3)

    print("KERNEL_OK")
</pallas_src>

<mosaic_0001>
module attributes {stable_mosaic.version = 11 : i64} {
  func.func @_l1_loss_kernel(%arg0: i32, %arg1: i32, %arg2: memref<48x25xf32, #tpu.memory_space<vmem>>, %arg3: memref<1x1x48xi32, #tpu.memory_space<vmem>>, %arg4: memref<1x1x25xf32, #tpu.memory_space<vmem>>, %arg5: memref<1x25xf32, #tpu.memory_space<vmem>>, %arg6: memref<25x25xf32, #tpu.memory_space<vmem>>) attributes {dimension_semantics = [#tpu.dimension_semantics<parallel>, #tpu.dimension_semantics<arbitrary>], iteration_bounds = array<i64: 1, 1>, scalar_prefetch = 0 : i64, scratch_operands = 2 : i64, tpu.core_type = #tpu.core_type<tc>, window_params = [{transform_indices = @transform_0, window_bounds = array<i64: 48, 25>}, {transform_indices = @transform_1, window_bounds = array<i64: 1, 1, 48>}, {transform_indices = @transform_2, window_bounds = array<i64: 1, 1, 25>}]} {
    %c0_i32 = arith.constant 0 : i32
    %0 = arith.cmpi eq, %arg1, %c0_i32 : i32
    %1 = arith.extui %0 : i1 to i32
    %c0_i32_0 = arith.constant 0 : i32
    %2 = arith.cmpi ne, %1, %c0_i32_0 : i32
    scf.if %2 {
      %cst_10 = arith.constant 0.000000e+00 : f32
      %29 = vector.broadcast %cst_10 : f32 to vector<1x25xf32>
      %c0_11 = arith.constant 0 : index
      %c0_12 = arith.constant 0 : index
      %30 = vector.load %arg5[%c0_11, %c0_12] : memref<1x25xf32, #tpu.memory_space<vmem>>, vector<1x25xf32>
      tpu.vector_store %arg5[%c0_11, %c0_12], %29 {strides = array<i32>} : memref<1x25xf32, #tpu.memory_space<vmem>>, vector<1x25xf32>,
      %cst_13 = arith.constant 0.000000e+00 : f32
      %31 = vector.broadcast %cst_13 : f32 to vector<25x25xf32>
      %c0_14 = arith.constant 0 : index
      %c0_15 = arith.constant 0 : index
      %32 = vector.load %arg6[%c0_14, %c0_15] : memref<25x25xf32, #tpu.memory_space<vmem>>, vector<25x25xf32>
      tpu.vector_store %arg6[%c0_14, %c0_15], %31 {strides = array<i32>} : memref<25x25xf32, #tpu.memory_space<vmem>>, vector<25x25xf32>,
    } else {
    }
    %c0 = arith.constant 0 : index
    %c0_1 = arith.constant 0 : index
    %3 = vector.load %arg2[%c0, %c0_1] : memref<48x25xf32, #tpu.memory_space<vmem>>, vector<48x25xf32>
    %c0_2 = arith.constant 0 : index
    %c0_3 = arith.constant 0 : index
    %c0_4 = arith.constant 0 : index
    %4 = vector.load %arg3[%c0_2, %c0_3, %c0_4] : memref<1x1x48xi32, #tpu.memory_space<vmem>>, vector<1x1x48xi32>
    %5 = vector.shape_cast %4 : vector<1x1x48xi32> to vector<1x48xi32>
    %6 = tpu.iota {dimensions = array<i32: 0>} : vector<25x48xi32>
    %7 = vector.broadcast %5 : vector<1x48xi32> to vector<25x48xi32>
    %8 = arith.cmpi eq, %6, %7 : vector<25x48xi32>
    %9 = arith.extui %8 : vector<25x48xi1> to vector<25x48xi32>
    %10 = arith.sitofp %9 : vector<25x48xi32> to vector<25x48xf32>
    %11 = math.absf %3 : vector<48x25xf32>
    %cst = arith.constant 1.000000e+00 : f32
    %12 = vector.broadcast %cst : f32 to vector<48x25xf32>
    %13 = arith.subf %12, %3 : vector<48x25xf32>
    %14 = math.absf %13 : vector<48x25xf32>
    %15 = arith.subf %14, %11 : vector<48x25xf32>
    %c1_i32 = arith.constant 1 : i32
    %16 = arith.muli %arg0, %c1_i32 : i32
    %17 = arith.addi %16, %arg1 : i32
    %c1_i32_5 = arith.constant 1 : i32
    %18 = arith.addi %17, %c1_i32_5 : i32
    %c48_i32 = arith.constant 48 : i32
    %19 = arith.muli %18, %c48_i32 : i32
    %c37_i32 = arith.constant 37 : i32
    %20 = arith.cmpi sgt, %19, %c37_i32 : i32
    %true = arith.constant true
    %21 = arith.xori %20, %true : i1
    %22 = arith.extui %21 : i1 to i32
    %c0_i32_6 = arith.constant 0 : i32
    %23 = arith.cmpi ne, %22, %c0_i32_6 : i32
    scf.if %23 {
      %c0_10 = arith.constant 0 : index
      %c0_11 = arith.constant 0 : index
      %29 = vector.load %arg5[%c0_10, %c0_11] : memref<1x25xf32, #tpu.memory_space<vmem>>, vector<1x25xf32>
      %cst_12 = arith.constant dense<0.000000e+00> : vector<25xf32>
      %30 = vector.multi_reduction <add>, %11, %cst_12 [0] : vector<48x25xf32> to vector<25xf32>
      %31 = vector.shape_cast %30 : vector<25xf32> to vector<1x25xf32>
      %32 = arith.addf %29, %31 : vector<1x25xf32>
      %c0_13 = arith.constant 0 : index
      %c0_14 = arith.constant 0 : index
      %33 = vector.load %arg5[%c0_13, %c0_14] : memref<1x25xf32, #tpu.memory_space<vmem>>, vector<1x25xf32>
      tpu.vector_store %arg5[%c0_13, %c0_14], %32 {strides = array<i32>} : memref<1x25xf32, #tpu.memory_space<vmem>>, vector<1x25xf32>,
      %c0_15 = arith.constant 0 : index
      %c0_16 = arith.constant 0 : index
      %34 = vector.load %arg6[%c0_15, %c0_16] : memref<25x25xf32, #tpu.memory_space<vmem>>, vector<25x25xf32>
      %cst_17 = arith.constant dense<0.000000e+00> : vector<25x25xf32>
      %35 = tpu.matmul %10, %15, %cst_17 {dimension_numbers = #tpu.dot_dimension_numbers<[1], [0], [0], [1], [0, 0, 1, 1], [], []>} : vector<25x48xf32>, vector<48x25xf32>, vector<25x25xf32> -> vector<25x25xf32>
      %36 = arith.addf %34, %35 : vector<25x25xf32>
      %c0_18 = arith.constant 0 : index
      %c0_19 = arith.constant 0 : index
      %37 = vector.load %arg6[%c0_18, %c0_19] : memref<25x25xf32, #tpu.memory_space<vmem>>, vector<25x25xf32>
      tpu.vector_store %arg6[%c0_18, %c0_19], %36 {strides = array<i32>} : memref<25x25xf32, #tpu.memory_space<vmem>>, vector<25x25xf32>,
    } else {
    }
    %24 = arith.extui %20 : i1 to i32
    %c0_i32_7 = arith.constant 0 : i32
    %25 = arith.cmpi ne, %24, %c0_i32_7 : i32
    scf.if %25 {
      %c48_i32_10 = arith.constant 48 : i32
      %29 = arith.muli %17, %c48_i32_10 : i32
      %c37_i32_11 = arith.constant 37 : i32
      %30 = arith.subi %c37_i32_11, %29 : i32
      %31 = tpu.iota {dimensions = array<i32: 0>} : vector<48x25xi32>
      %32 = vector.broadcast %30 : i32 to vector<48x25xi32>
      %33 = arith.cmpi slt, %31, %32 : vector<48x25xi32>
      %cst_12 = arith.constant 0.000000e+00 : f32
      %34 = vector.broadcast %cst_12 : f32 to vector<48x25xf32>
      %35 = arith.select %33, %11, %34 : vector<48x25xi1>, vector<48x25xf32>
      %cst_13 = arith.constant 0.000000e+00 : f32
      %36 = vector.broadcast %cst_13 : f32 to vector<48x25xf32>
      %37 = arith.select %33, %15, %36 : vector<48x25xi1>, vector<48x25xf32>
      %c0_14 = arith.constant 0 : index
      %c0_15 = arith.constant 0 : index
      %38 = vector.load %arg5[%c0_14, %c0_15] : memref<1x25xf32, #tpu.memory_space<vmem>>, vector<1x25xf32>
      %cst_16 = arith.constant dense<0.000000e+00> : vector<25xf32>
      %39 = vector.multi_reduction <add>, %35, %cst_16 [0] : vector<48x25xf32> to vector<25xf32>
      %40 = vector.shape_cast %39 : vector<25xf32> to vector<1x25xf32>
      %41 = arith.addf %38, %40 : vector<1x25xf32>
      %c0_17 = arith.constant 0 : index
      %c0_18 = arith.constant 0 : index
      %42 = vector.load %arg5[%c0_17, %c0_18] : memref<1x25xf32, #tpu.memory_space<vmem>>, vector<1x25xf32>
      tpu.vector_store %arg5[%c0_17, %c0_18], %41 {strides = array<i32>} : memref<1x25xf32, #tpu.memory_space<vmem>>, vector<1x25xf32>,
      %c0_19 = arith.constant 0 : index
      %c0_20 = arith.constant 0 : index
      %43 = vector.load %arg6[%c0_19, %c0_20] : memref<25x25xf32, #tpu.memory_space<vmem>>, vector<25x25xf32>
      %cst_21 = arith.constant dense<0.000000e+00> : vector<25x25xf32>
      %44 = tpu.matmul %10, %37, %cst_21 {dimension_numbers = #tpu.dot_dimension_numbers<[1], [0], [0], [1], [0, 0, 1, 1], [], []>} : vector<25x48xf32>, vector<48x25xf32>, vector<25x25xf32> -> vector<25x25xf32>
      %45 = arith.addf %43, %44 : vector<25x25xf32>
      %c0_22 = arith.constant 0 : index
      %c0_23 = arith.constant 0 : index
      %46 = vector.load %arg6[%c0_22, %c0_23] : memref<25x25xf32, #tpu.memory_space<vmem>>, vector<25x25xf32>
      tpu.vector_store %arg6[%c0_22, %c0_23], %45 {strides = array<i32>} : memref<25x25xf32, #tpu.memory_space<vmem>>, vector<25x25xf32>,
    } else {
    }
    %c0_i32_8 = arith.constant 0 : i32
    %26 = arith.cmpi eq, %arg1, %c0_i32_8 : i32
    %27 = arith.extui %26 : i1 to i32
    %c0_i32_9 = arith.constant 0 : i32
    %28 = arith.cmpi ne, %27, %c0_i32_9 : i32
    scf.if %28 {
      %29 = tpu.iota {dimensions = array<i32: 0>} : vector<25x25xi32>
      %30 = tpu.iota {dimensions = array<i32: 1>} : vector<25x25xi32>
      %31 = arith.cmpi eq, %29, %30 : vector<25x25xi32>
      %32 = arith.extui %31 : vector<25x25xi1> to vector<25x25xi32>
      %33 = arith.sitofp %32 : vector<25x25xi32> to vector<25x25xf32>
      %c0_10 = arith.constant 0 : index
      %c0_11 = arith.constant 0 : index
      %34 = vector.load %arg6[%c0_10, %c0_11] : memref<25x25xf32, #tpu.memory_space<vmem>>, vector<25x25xf32>
      %35 = arith.mulf %34, %33 : vector<25x25xf32>
      %cst_12 = arith.constant dense<0.000000e+00> : vector<25xf32>
      %36 = vector.multi_reduction <add>, %35, %cst_12 [0] : vector<25x25xf32> to vector<25xf32>
      %37 = vector.shape_cast %36 : vector<25xf32> to vector<1x25xf32>
      %c0_13 = arith.constant 0 : index
      %c0_14 = arith.constant 0 : index
      %38 = vector.load %arg5[%c0_13, %c0_14] : memref<1x25xf32, #tpu.memory_space<vmem>>, vector<1x25xf32>
      %39 = arith.addf %38, %37 : vector<1x25xf32>
      %40 = vector.shape_cast %39 : vector<1x25xf32> to vector<1x1x25xf32>
      %c0_15 = arith.constant 0 : index
      %c0_16 = arith.constant 0 : index
      %c0_17 = arith.constant 0 : index
      %41 = vector.load %arg4[%c0_15, %c0_16, %c0_17] : memref<1x1x25xf32, #tpu.memory_space<vmem>>, vector<1x1x25xf32>
      tpu.vector_store %arg4[%c0_15, %c0_16, %c0_17], %40 {strides = array<i32>} : memref<1x1x25xf32, #tpu.memory_space<vmem>>, vector<1x1x25xf32>,
    } else {
    }
    return
  }
  func.func @transform_0(%arg0: i32, %arg1: i32) -> (i32, i32) {
    %c1_i32 = arith.constant 1 : i32
    %0 = arith.muli %arg0, %c1_i32 : i32
    %1 = arith.addi %0, %arg1 : i32
    %c0_i32 = arith.constant 0 : i32
    %2 = arith.minsi %1, %c0_i32 : i32
    %c0_i32_0 = arith.constant 0 : i32
    %c0_i32_1 = arith.constant 0 : i32
    return %2, %c0_i32_0 : i32, i32
  }
  func.func @transform_1(%arg0: i32, %arg1: i32) -> (i32, i32, i32) {
    %c1_i32 = arith.constant 1 : i32
    %0 = arith.muli %arg0, %c1_i32 : i32
    %1 = arith.addi %0, %arg1 : i32
    %c0_i32 = arith.constant 0 : i32
    %2 = arith.minsi %1, %c0_i32 : i32
    %c0_i32_0 = arith.constant 0 : i32
    %c0_i32_1 = arith.constant 0 : i32
    %c0_i32_2 = arith.constant 0 : i32
    return %2, %c0_i32_0, %c0_i32_1 : i32, i32, i32
  }
  func.func @transform_2(%arg0: i32, %arg1: i32) -> (i32, i32, i32) {
    %c0_i32 = arith.constant 0 : i32
    %c0_i32_0 = arith.constant 0 : i32
    %c0_i32_1 = arith.constant 0 : i32
    return %arg0, %c0_i32, %c0_i32_0 : i32, i32, i32
  }
}

</mosaic_0001>

<bundles_post_ra>
// kernel: tpu_custom_call.1
= control target key start
LH: loop header
LB: loop body
LE: loop exit
PB: predicated region body
PF: predicated region fallthrough
CT: control target
= control target key end

     0   :  { %vm84_vm0 = vcmask 203776   ;;  %v96_v3 = vlaneseq  ;;  %v588_v8 = vmov 0.0   ;;  %vm333_vm1 = vcmask 392192   ;;  %s702_s0 = inlined_call_operand.vmem [shape: f32[37,25], index: 0, kind: input, shape index: {}]   ;;  %s703_s1 = inlined_call_operand.vmem [shape: s32[1,1,48], index: 1, kind: input, shape index: {}]   ;;  %s704_s2 = inlined_call_operand.hbm [shape: f32[1,1,25], index: 2, kind: output, shape index: {}]  }
   0x1   :  { %v89_v0 = vld [vmem:[%s702_s0] sm:$0xff]  ;;  %v90_v1 = vld [vmem:[%s702_s0 + $0x8] sm:$0xff]  ;;  %v91_v2 = vld [vmem:[%s702_s0 + $0x10] sm:$0xff]  ;;  %85 = vst.msk [vmem:[#allocation3] sm:$0xff] %vm84_vm0, %v588_v8 }
   0x2   :  { %v117_v4 = vand.u32 2147483647, %v89_v0  ;;  %v118_v5 = vand.u32 2147483647, %v90_v1  ;;  %v123_v6 = vsub.f32 1.0, %v89_v0  ;;  %v124_v7 = vsub.f32 1.0, %v90_v1 }
   0x3   :  { %86 = vst.msk [vmem:[#allocation3 + $0x8] sm:$0xff] %vm84_vm0, %v588_v8  ;;  %87 = vst.msk [vmem:[#allocation3 + $0x10] sm:$0xff] %vm84_vm0, %v588_v8  ;;  %v92_v9 = vld [vmem:[%s702_s0 + $0x18] sm:$0xff]  ;;  %v119_v10 = vand.u32 2147483647, %v91_v2  ;;  %v125_v11 = vsub.f32 1.0, %v91_v2 }
   0x4   :  { %v623_v12 = vshrl.u32 %v96_v3, 7  ;;  %v129_v13 = vand.u32 2147483647, %v123_v6  ;;  %v130_v14 = vand.u32 2147483647, %v124_v7  ;;  %v309_v15 = vsel %vm84_vm0, %v117_v4, 0.0 }
   0x5   :  { %v310_v16 = vsel %vm84_vm0, %v118_v5, 0.0  ;;  %v120_v18 = vand.u32 2147483647, %v92_v9  ;;  %v126_v19 = vsub.f32 1.0, %v92_v9  ;;  %v131_v20 = vand.u32 2147483647, %v125_v11 }
   0x6   :  { %v311_v17 = vadd.f32 %v310_v16, %v309_v15  ;;  %v93_v21 = vld [vmem:[%s702_s0 + $0x20] sm:$0xff]  ;;  %v135_v22 = vsub.f32 %v129_v13, %v117_v4  ;;  %v136_v23 = vsub.f32 %v130_v14, %v118_v5  ;;  %v312_v24 = vsel %vm84_vm0, %v119_v10, 0.0 }
   0x7   :  { %v121_v25 = vand.u32 2147483647, %v93_v21  ;;  %v505_v26 = vld [vmem:[%s703_s1] ss:$0 sm:$0xff]  ;;  %v132_v27 = vand.u32 2147483647, %v126_v19  ;;  %v137_v28 = vsub.f32 %v131_v20, %v119_v10 }
   0x8   :  { %v313_v29 = vadd.f32 %v312_v24, %v311_v17  ;;  %v314_v30 = vsel %vm84_vm0, %v120_v18, 0.0 }
   0x9   :  { %7 = vsyncpa [#allocation5], 0  ;;  %v548_v31 = vpack.c.bf16 %v136_v23, %v135_v22  ;;  %v127_v32 = vsub.f32 1.0, %v93_v21  ;;  %v286_v33 = vadd.s32 32, %v623_v12  ;;  %vm105_vm2 = vcmp.eq.s32.totalorder %v623_v12, %v505_v26  ;;  %v329_v60 = vld [vmem:[#allocation3] sm:$0xff]  ;;  %s589_s0 = smov [#allocation4]  }
   0xa   :  { %v138_v34 = vsub.f32 %v132_v27, %v120_v18  ;;  %v315_v35 = vadd.f32 %v314_v30, %v313_v29  ;;  %v506_v36 = vsel %vm105_vm2, 1.0, %v588_v8  ;;  %v639_v37 = vadd.s32 8, %v623_v12  ;;  %v330_v58 = vld [vmem:[#allocation3 + $0x8] sm:$0xff]  ;;  %v331_v61 = vld [vmem:[#allocation3 + $0x10] sm:$0xff]  ;;  %s488_s1 = sshll.u32 %s589_s0, 4  ;;  %s489_s1 = int_to_ptr.vmem [resolvable:$true] %s488_s1 }
   0xb   :  { %549 = vmatprep.subr.bf16.mxu0 %v548_v31  ;;  %556 = vmatprep.subr.bf16.mxu1 %v548_v31  ;;  %v133_v38 = vand.u32 2147483647, %v127_v32  ;;  %vm293_vm3 = vcmp.lt.s32.totalorder %v286_v33, 37  ;;  %v641_v39 = vand.u32 127, %v96_v3  ;;  %v99_v40 = vadd.s32 16, %v623_v12  ;;  %s564_s21 = scalar_lea.vmem %s489_s1, 16  ;;  %p569_p1 = scmp.lt.s32.totalorder %s489_s1, %s489_s1 }
   0xc   :  { %551 = vmatpush3.bf16.msra.mxu0 %v548_v31  ;;  %559 = vmatpush3.bf16.msra.mxu1 %v548_v31  ;;  %v552_v41 = vpack.c.bf16 %v138_v34, %v137_v28  ;;  %v299_v42 = vsel %vm293_vm3, %v121_v25, 0.0  ;;  %v100_v43 = vadd.s32 24, %v623_v12  ;;  %vm106_vm7 = vcmp.eq.s32.totalorder %v639_v37, %v505_v26  ;;  %p565_p0 = scmp.ne.s32.totalorder %s489_s1, %s564_s21  ;;  %s568_s22 = scalar_lea.vmem %s489_s1, 32 }
   0xd   :  { %v139_v44 = vsub.f32 %v133_v38, %v121_v25  ;;  %v316_v45 = vsel %vm84_vm0, %v299_v42, 0.0  ;;  %542 = vmatprep.mubr.msk.f32.mxu0 %vm333_vm1, %v506_v36  ;;  %vm445_vm4 = vcmp.eq.s32.totalorder %v639_v37, %v641_v39  ;;  %vm107_vm5 = vcmp.eq.s32.totalorder %v99_v40, %v505_v26  ;;  %p570_p2 = scmp.lt.s32.totalorder %s568_s22, %s564_s21 }
   0xe   :  { %553 = vmatprep.subr.bf16.mxu0 %v552_v41  ;;  %557 = vmatprep.subr.bf16.mxu1 %v552_v41  ;;  %v317_v46 = vadd.f32 %v316_v45, %v315_v35  ;;  %vm446_vm6 = vcmp.eq.s32.totalorder %v99_v40, %v641_v39  ;;  %v508_v47 = vsel %vm107_vm5, 1.0, %v588_v8  ;;  %vm108_vm8 = vcmp.eq.s32.totalorder %v100_v43, %v505_v26 }
   0xf   :  { %vm447_vm9 = vcmp.eq.s32.totalorder %v100_v43, %v641_v39  ;;  %v507_v48 = vsel %vm106_vm7, 1.0, %v588_v8  ;;  %545 = vmatprep.mubr.msk.f32.mxu1 %vm333_vm1, %v508_v47  ;;  %v509_v49 = vsel %vm108_vm8, 1.0, %v588_v8  ;;  %vm82_vm10 = vcmask 196608   ;;  %p571_p3 = por %p570_p2, %p569_p1 }
  0x10   :  { %555 = vmatpush3.bf16.msra.mxu0 %v552_v41  ;;  %560 = vmatpush3.bf16.msra.mxu1 %v552_v41  ;;  %v320_v50 = vrot.slane %v317_v46, 4  ;;  %83 = vst.msk [vmem:[#allocation2] sm:$0x1] %vm82_vm10, %v588_v8  ;;  %88 = vst.msk [vmem:[#allocation3 + $0x18] sm:$0x1] %vm82_vm10, %v588_v8  ;;  %vm444_vm11 = vcmp.eq.s32.totalorder %v623_v12, %v641_v39  ;;  %v520_v6 = vsel %vm445_vm4, 1.0, %v588_v8 }
  0x11   :  { %540 = vmatprep.subr.msk.mxu0 %vm293_vm3, %v139_v44  ;;  %558 = vmatprep.subr.msk.mxu1 %vm293_vm3, %v139_v44  ;;  %v521_v7 = vsel %vm446_vm6, 1.0, %v588_v8  ;;  %v519_v9 = vsel %vm444_vm11, 1.0, %v588_v8  ;;  %v522_v11 = vsel %vm447_vm9, 1.0, %v588_v8  ;;  %p572_p4 = pnand %p571_p3, %p565_p0 }
  0x12   :  { %v321_v51 = vadd.f32 %v320_v50, %v317_v46 }
  0x14   :  { %541 = vmatpush3.msk.msra.mxu0 %vm293_vm3, %v139_v44  ;;  %561 = vmatpush3.msk.msra.mxu1 %vm293_vm3, %v139_v44  ;;  %v322_v52 = vrot.slane %v321_v51, 2 }
  0x15   :  { %543 = vmatmul.mubr.msk.f32.vlgmr.msra.gmra.mrb[0].mxu0 %vm333_vm1, %v507_v48  ;;  %546 = vmatmul.mubr.msk.f32.vlgmr.msra.gmra.mrb[0].mxu1 %vm333_vm1, %v509_v49 }
  0x16   :  { %v323_v53 = vadd.f32 %v322_v52, %v321_v51 }
  0x17   :  { %v307_v56 = vld [vmem:[#allocation2] sm:$0x1]  ;;  %v332_v59 = vld [vmem:[#allocation3 + $0x18] sm:$0x1] }
  0x18   :  { %v324_v54 = vrot.slane %v323_v53, 1 }
  0x1a   :  { %v325_v55 = vadd.f32 %v324_v54, %v323_v53 }
  0x1c   :  { %v326_v57 = vadd.f32 %v325_v55, %v307_v56 }
  0x1e   :  { %328 = vst.msk [vmem:[#allocation2] sm:$0x1] %vm82_vm10, %v326_v57 }
  0x25   :  { %v479_v30 = vld [vmem:[#allocation2] sm:$0x1] }
  0xe8   :  { %v544_v62 = vpop.f32.mrb[0].mxu0  ;;  %v547_v63 = vpop.f32.mrb[0].mxu1 }
  0xe9   :  { %v432_v0 = vadd.f32 %v544_v62, %v330_v58  ;;  %v412_v1 = vpop.f32.mrb[1].mxu0  ;;  %v434_v2 = vadd.f32 %v547_v63, %v332_v59  ;;  %v422_v3 = vpop.f32.mrb[1].mxu1 }
  0xea   :  { %v431_v4 = vadd.f32 %v412_v1, %v329_v60  ;;  %v433_v5 = vadd.f32 %v422_v3, %v331_v61 }
  0xeb   :  { %436 = vst.msk [vmem:[#allocation3 + $0x8] sm:$0xff] %vm84_vm0, %v432_v0 }
  0xec   :  { %438 = vst.msk [vmem:[#allocation3 + $0x18] sm:$0x1] %vm82_vm10, %v434_v2 }
  0xed   :  { %435 = vst.msk [vmem:[#allocation3] sm:$0xff] %vm84_vm0, %v431_v4  ;;  %437 = vst.msk [vmem:[#allocation3 + $0x10] sm:$0xff] %vm84_vm0, %v433_v5 }
  0xf2   :  { %v457_v10 = vld [vmem:[#allocation3 + $0x8] sm:$0xff] }
  0xf3   :  { %v459_v15 = vld [vmem:[#allocation3 + $0x18] sm:$0x1]  ;;  %v461_v12 = vmul.f32 %v520_v6, %v457_v10 }
  0xf4   :  { %v456_v13 = vld [vmem:[#allocation3] sm:$0xff]  ;;  %v458_v14 = vld [vmem:[#allocation3 + $0x10] sm:$0xff]  ;;  %v463_v19 = vmul.f32 %v522_v11, %v459_v15 }
  0xf5   :  { %v460_v16 = vmul.f32 %v519_v9, %v456_v13  ;;  %v462_v17 = vmul.f32 %v521_v7, %v458_v14  ;;  %v466_v18 = vsel %vm84_vm0, %v461_v12, 0.0 }
  0xf6   :  { %v471_v24 = vsel %vm82_vm10, %v463_v19, 0.0 }
  0xf7   :  { %v465_v20 = vsel %vm84_vm0, %v460_v16, 0.0  ;;  %v468_v21 = vsel %vm84_vm0, %v462_v17, 0.0 }
  0xf8   :  { %v467_v22 = vadd.f32 %v466_v18, %v465_v20 }
  0xfa   :  { %v469_v23 = vadd.f32 %v468_v21, %v467_v22 }
  0xfc   :  { %v472_v25 = vadd.f32 %v471_v24, %v469_v23 }
  0xfe   :  { %v473_v26 = vrot.slane %v472_v25, 4 }
 0x100   :  { %v474_v8 = vadd.f32 %v473_v26, %v472_v25 }
 0x102   :  { %v475_v27 = vrot.slane %v474_v8, 2 }
 0x104   :  { %v476_v28 = vadd.f32 %v475_v27, %v474_v8 }
 0x106   :  { %v477_v29 = vrot.slane %v476_v28, 1 }
 0x108   :  { %v478_v31 = vadd.f32 %v477_v29, %v476_v28 }
 0x10a   :  { %v480_v32 = vadd.f32 %v479_v30, %v478_v31 }
 0x10c   :  { %481 = vst.msk [vmem:[#allocation4] sm:$0x1] %vm82_vm10, %v480_v32 }
 0x10d   :  { %575 = shalt.err (!%p572_p4)
}
 0x10e   :  { %s576_s25 = scalar_lea.hbm %s704_s2, 16 }
 0x10f   :  { %p577_p5 = scmp.ne.s32.totalorder %s704_s2, %s576_s25  ;;  %p580_p6 = scmp.lt.u32.totalorder %s576_s25, %s704_s2 }
 0x111   :  { %p582_p7 = pnand %p580_p6, %p577_p5 }
 0x113   :  { %585 = shalt.err (!%p582_p7)
}
 0x114   :  { %491 = dma.vmem_to_hbm [thread:$0]  %s489_s1, 16, %s704_s2, [#allocation5]  }
 0x115   :  { %586 = dma.done.wait [#allocation5], 16  }
 0x116   :  { %587 = vsyncadd [#allocation5], 4294967280 }
 0x117   :  { %495 = vsyncpa [#allocation5], 1 }

</bundles_post_ra>
